<compile_context>
chip_gen: v6e
topology: v6e:2x2x1
jax: 0.10.0
libtpu: 0.0.40
codegen_flags: <defaults>
</compile_context>

<pallas_src>
import functools

import jax
import jax.numpy as jnp
from jax.experimental import pallas as pl
from jax.experimental.pallas import tpu as pltpu

_LANE = 128
_EPS = 1e-5


def _round_up(x, m):
    return ((x + m - 1) // m) * m


def _device_kind():
    try:
        return jax.devices()[0].device_kind.lower()
    except Exception:
        return ""


def default_use_bf16_matmul():
    """bf16 activations into the MXU everywhere except v5e (no bf16 VPU)."""
    kind = _device_kind()
    return not ("v5" in kind)


def _vmem_cap_bytes():
    """Generation-aware ceiling for vmem_limit_bytes."""
    kind = _device_kind()
    if "v7" in kind:
        return 48 << 20   # leave headroom under v7x's 64 MiB/TC
    return 96 << 20       # v5e / v6e: 128 MiB physical VMEM


def _mlp_fused_kernel(x_ref, *refs, num_layers, apply_bn, apply_relu, eps,
                      use_bf16_matmul):
    """Fully fused MLP forward: (Linear -> BN(batch stats) -> ReLU) x L.

    refs layout (all VMEM):
      batch_norm=True : (w0, g0, be0, w1, g1, be1, ..., o_ref)   -- bias dropped
      batch_norm=False: (w0, b0, w1, b1, ..., o_ref)
    Layers are unrolled (static layer list) so activations live in vregs /
    compiler-managed VMEM, never HBM.
    """
    o_ref = refs[-1]
    param_refs = refs[:-1]
    per_layer = 3 if apply_bn else 2

    h = x_ref[...].astype(jnp.float32)            # (N, F0_pad)
    n = x_ref.shape[0]
    inv_n = 1.0 / n

    for i in range(num_layers):
        lp = param_refs[per_layer * i: per_layer * (i + 1)]
        w_ref = lp[0]                              # bf16, (in_pad, out_pad)

        if use_bf16_matmul:
            # bf16 inputs, f32 accumulation: MXU peak on v6e/v7x.
            a = h.astype(jnp.bfloat16)
            w = w_ref[...]
        else:
            # v5e path: keep activations f32 (no bf16 VPU); weights were stored
            # bf16 for DMA only and are widened here.
            a = h
            w = w_ref[...].astype(jnp.float32)
        h = jnp.dot(a, w, preferred_element_type=jnp.float32)

        if apply_bn:
            g_ref, be_ref = lp[1], lp[2]
            # Training-mode BatchNorm1d: batch mean + biased variance, f32.
            # Linear bias omitted (exactly cancelled by mean subtraction).
            mean = jnp.sum(h, axis=0, keepdims=True) * inv_n        # (1, out)
            c = h - mean
            var = jnp.sum(c * c, axis=0, keepdims=True) * inv_n     # biased var
            scale = g_ref[...] * jax.lax.rsqrt(var + eps)           # gamma fold
            h = c * scale + be_ref[...]
        else:
            b_ref = lp[1]
            h = h + b_ref[...]

        if apply_relu:
            h = jnp.maximum(h, 0.0)

    o_ref[...] = h.astype(o_ref.dtype)


def init_mlp_params(key, layer_dims):
    """Deterministic params matching nn.Linear / nn.BatchNorm1d defaults."""
    params = []
    for i in range(len(layer_dims) - 1):
        in_dim, out_dim = layer_dims[i], layer_dims[i + 1]
        key, kw, kb = jax.random.split(key, 3)
        bound = 1.0 / (in_dim ** 0.5)            # PyTorch Linear default init
        w = jax.random.uniform(kw, (out_dim, in_dim), jnp.float32, -bound, bound)
        b = jax.random.uniform(kb, (out_dim,), jnp.float32, -bound, bound)
        gamma = jnp.ones((out_dim,), jnp.float32)   # BatchNorm1d weight init
        beta = jnp.zeros((out_dim,), jnp.float32)   # BatchNorm1d bias init
        params.append((w, b, gamma, beta))
    return params


def pack_params_for_kernel(params, layer_dims, batch_norm=True):
    """One-time packing: transpose weights to (in, out), zero-pad feature dims
    to 128 and store weights in bf16.  When batch_norm=True the Linear bias is
    intentionally NOT packed (BN cancels it)."""
    packed = []
    for (w, b, gamma, beta), in_dim, out_dim in zip(
            params, layer_dims[:-1], layer_dims[1:]):
        in_pad = _round_up(in_dim, _LANE)
        out_pad = _round_up(out_dim, _LANE)
        wt = jnp.zeros((in_pad, out_pad), jnp.float32).at[:in_dim, :out_dim].set(w.T)
        wt = wt.astype(jnp.bfloat16)
        if batch_norm:
            gp = jnp.zeros((1, out_pad), jnp.float32).at[:, :out_dim].set(gamma)
            bep = jnp.zeros((1, out_pad), jnp.float32).at[:, :out_dim].set(beta)
            packed.extend([wt, gp, bep])
        else:
            bp = jnp.zeros((1, out_pad), jnp.float32).at[:, :out_dim].set(b)
            packed.extend([wt, bp])
    return packed


@functools.partial(
    jax.jit,
    static_argnames=("layer_dims", "batch_norm", "relu", "use_bf16_matmul"))
def mlp_forward(x, packed_params, *, layer_dims, batch_norm=True, relu=True,
                use_bf16_matmul=True):
    """Mirrors MLP.forward: one fused Pallas kernel over the whole layer stack."""
    n, f0 = x.shape
    assert f0 == layer_dims[0]
    num_layers = len(layer_dims) - 1
    in_pad = _round_up(layer_dims[0], _LANE)
    out_dim = layer_dims[-1]
    out_pad = _round_up(out_dim, _LANE)

    # Lane-dense input slab (zero pad is inert: padded weight rows are zero).
    x_p = jnp.zeros((n, in_pad), jnp.float32).at[:, :f0].set(x)

    # Static VMEM budget / cost estimate from padded shapes & packed dtypes.
    dims_pad = tuple(_round_up(d, _LANE) for d in layer_dims)
    param_bytes = sum(int(p.size) * p.dtype.itemsize for p in packed_params)
    act_bytes = (n * in_pad + n * out_pad + n * max(dims_pad)) * 4
    vmem_limit = int(min(_vmem_cap_bytes(),
                         max(4 << 20, 2 * (param_bytes + act_bytes))))
    flops = sum(2 * n * di * do for di, do in zip(dims_pad[:-1], dims_pad[1:]))
    trans = sum(dims_pad[1:]) if batch_norm else 0          # one rsqrt row/layer
    bytes_accessed = param_bytes + (n * in_pad + n * out_pad) * 4
    cost = pl.CostEstimate(flops=flops, transcendentals=trans,
                           bytes_accessed=bytes_accessed)

    kern = functools.partial(
        _mlp_fused_kernel, num_layers=num_layers, apply_bn=batch_norm,
        apply_relu=relu, eps=_EPS, use_bf16_matmul=use_bf16_matmul)

    vmem_spec = pl.BlockSpec(memory_space=pltpu.MemorySpace.VMEM)
    out_p = pl.pallas_call(
        kern,
        out_shape=jax.ShapeDtypeStruct((n, out_pad), jnp.float32),
        in_specs=[vmem_spec] * (1 + len(packed_params)),
        out_specs=vmem_spec,
        compiler_params=pltpu.CompilerParams(vmem_limit_bytes=vmem_limit),
        cost_estimate=cost,
    )(x_p, *packed_params)

    return out_p[:, :out_dim]


if __name__ == "__main__":
    key = jax.random.PRNGKey(0)
    layer_dims = (32, 64, 16)
    batch = 8
    use_bf16 = default_use_bf16_matmul()

    kx, kp = jax.random.split(key)
    x = jax.random.normal(kx, (batch, layer_dims[0]), jnp.float32)
    params = init_mlp_params(kp, layer_dims)
    packed = pack_params_for_kernel(params, layer_dims, batch_norm=True)

    out = mlp_forward(x, packed, layer_dims=layer_dims,
                      batch_norm=True, relu=True, use_bf16_matmul=use_bf16)
    out = jax.block_until_ready(out)

    # Reference #1: pure-JAX mirror of the kernel math (bias dropped, bf16
    # weights, gamma folded) -> tight tolerance validates fused BN/ReLU logic.
    ref = x
    for (w, b, gamma, beta) in params:
        wt = w.T.astype(jnp.bfloat16)
        a = ref.astype(jnp.bfloat16) if use_bf16 else ref
        wk = wt if use_bf16 else wt.astype(jnp.float32)
        h = jnp.dot(a, wk, preferred_element_type=jnp.float32)
        m = jnp.mean(h, axis=0, keepdims=True)
        v = jnp.mean((h - m) ** 2, axis=0, keepdims=True)
        h = (h - m) * (gamma * jax.lax.rsqrt(v + _EPS)) + beta
        ref = jnp.maximum(h, 0.0)

    # Reference #2: PyTorch-semantics full-f32 forward (with bias, f32 matmul);
    # looser tolerance bounds the bf16-weight quantization error.
    ref32 = x
    for (w, b, gamma, beta) in params:
        h = ref32 @ w.T + b
        m = jnp.mean(h, axis=0, keepdims=True)
        v = jnp.mean((h - m) ** 2, axis=0, keepdims=True)
        h = (h - m) / jnp.sqrt(v + _EPS) * gamma + beta
        ref32 = jnp.maximum(h, 0.0)

    assert out.shape == (batch, layer_dims[-1])
    assert jnp.allclose(out, ref, atol=1e-3, rtol=1e-3), \
        float(jnp.max(jnp.abs(out - ref)))
    assert jnp.allclose(out, ref32, atol=5e-2, rtol=5e-2), \
        float(jnp.max(jnp.abs(out - ref32)))

    print("KERNEL_OK")
</pallas_src>

<mosaic_0001>
module attributes {stable_mosaic.version = 11 : i64} {
  func.func @_mlp_fused_kernel(%arg0: memref<8x128xf32, #tpu.memory_space<vmem>>, %arg1: memref<128x128xbf16, #tpu.memory_space<vmem>>, %arg2: memref<1x128xf32, #tpu.memory_space<vmem>>, %arg3: memref<1x128xf32, #tpu.memory_space<vmem>>, %arg4: memref<128x128xbf16, #tpu.memory_space<vmem>>, %arg5: memref<1x128xf32, #tpu.memory_space<vmem>>, %arg6: memref<1x128xf32, #tpu.memory_space<vmem>>, %arg7: memref<8x128xf32, #tpu.memory_space<vmem>>) attributes {dimension_semantics = [], scalar_prefetch = 0 : i64, scratch_operands = 0 : i64, tpu.core_type = #tpu.core_type<tc>} {
    %c0 = arith.constant 0 : index
    %c0_0 = arith.constant 0 : index
    %0 = vector.load %arg0[%c0, %c0_0] : memref<8x128xf32, #tpu.memory_space<vmem>>, vector<8x128xf32>
    %1 = arith.truncf %0 : vector<8x128xf32> to vector<8x128xbf16>
    %c0_1 = arith.constant 0 : index
    %c0_2 = arith.constant 0 : index
    %2 = vector.load %arg1[%c0_1, %c0_2] : memref<128x128xbf16, #tpu.memory_space<vmem>>, vector<128x128xbf16>
    %cst = arith.constant dense<0.000000e+00> : vector<8x128xf32>
    %3 = tpu.matmul %1, %2, %cst {dimension_numbers = #tpu.dot_dimension_numbers<[1], [0], [0], [1], [0, 0, 1, 1], [], []>} : vector<8x128xbf16>, vector<128x128xbf16>, vector<8x128xf32> -> vector<8x128xf32>
    %cst_3 = arith.constant dense<0.000000e+00> : vector<128xf32>
    %4 = vector.multi_reduction <add>, %3, %cst_3 [0] : vector<8x128xf32> to vector<128xf32>
    %5 = vector.shape_cast %4 : vector<128xf32> to vector<1x128xf32>
    %cst_4 = arith.constant 1.250000e-01 : f32
    %6 = vector.broadcast %cst_4 : f32 to vector<1x128xf32>
    %7 = arith.mulf %5, %6 : vector<1x128xf32>
    %8 = vector.broadcast %7 : vector<1x128xf32> to vector<8x128xf32>
    %9 = arith.subf %3, %8 : vector<8x128xf32>
    %10 = arith.mulf %9, %9 : vector<8x128xf32>
    %cst_5 = arith.constant dense<0.000000e+00> : vector<128xf32>
    %11 = vector.multi_reduction <add>, %10, %cst_5 [0] : vector<8x128xf32> to vector<128xf32>
    %12 = vector.shape_cast %11 : vector<128xf32> to vector<1x128xf32>
    %cst_6 = arith.constant 1.250000e-01 : f32
    %13 = vector.broadcast %cst_6 : f32 to vector<1x128xf32>
    %14 = arith.mulf %12, %13 : vector<1x128xf32>
    %c0_7 = arith.constant 0 : index
    %c0_8 = arith.constant 0 : index
    %15 = vector.load %arg2[%c0_7, %c0_8] : memref<1x128xf32, #tpu.memory_space<vmem>>, vector<1x128xf32>
    %cst_9 = arith.constant 9.99999974E-6 : f32
    %16 = vector.broadcast %cst_9 : f32 to vector<1x128xf32>
    %17 = arith.addf %14, %16 : vector<1x128xf32>
    %18 = math.rsqrt %17 : vector<1x128xf32>
    %19 = arith.mulf %15, %18 : vector<1x128xf32>
    %20 = vector.broadcast %19 : vector<1x128xf32> to vector<8x128xf32>
    %21 = arith.mulf %9, %20 : vector<8x128xf32>
    %c0_10 = arith.constant 0 : index
    %c0_11 = arith.constant 0 : index
    %22 = vector.load %arg3[%c0_10, %c0_11] : memref<1x128xf32, #tpu.memory_space<vmem>>, vector<1x128xf32>
    %23 = vector.broadcast %22 : vector<1x128xf32> to vector<8x128xf32>
    %24 = arith.addf %21, %23 : vector<8x128xf32>
    %cst_12 = arith.constant 0.000000e+00 : f32
    %25 = vector.broadcast %cst_12 : f32 to vector<8x128xf32>
    %26 = arith.maximumf %24, %25 : vector<8x128xf32>
    %27 = arith.truncf %26 : vector<8x128xf32> to vector<8x128xbf16>
    %c0_13 = arith.constant 0 : index
    %c0_14 = arith.constant 0 : index
    %28 = vector.load %arg4[%c0_13, %c0_14] : memref<128x128xbf16, #tpu.memory_space<vmem>>, vector<128x128xbf16>
    %cst_15 = arith.constant dense<0.000000e+00> : vector<8x128xf32>
    %29 = tpu.matmul %27, %28, %cst_15 {dimension_numbers = #tpu.dot_dimension_numbers<[1], [0], [0], [1], [0, 0, 1, 1], [], []>} : vector<8x128xbf16>, vector<128x128xbf16>, vector<8x128xf32> -> vector<8x128xf32>
    %cst_16 = arith.constant dense<0.000000e+00> : vector<128xf32>
    %30 = vector.multi_reduction <add>, %29, %cst_16 [0] : vector<8x128xf32> to vector<128xf32>
    %31 = vector.shape_cast %30 : vector<128xf32> to vector<1x128xf32>
    %cst_17 = arith.constant 1.250000e-01 : f32
    %32 = vector.broadcast %cst_17 : f32 to vector<1x128xf32>
    %33 = arith.mulf %31, %32 : vector<1x128xf32>
    %34 = vector.broadcast %33 : vector<1x128xf32> to vector<8x128xf32>
    %35 = arith.subf %29, %34 : vector<8x128xf32>
    %36 = arith.mulf %35, %35 : vector<8x128xf32>
    %cst_18 = arith.constant dense<0.000000e+00> : vector<128xf32>
    %37 = vector.multi_reduction <add>, %36, %cst_18 [0] : vector<8x128xf32> to vector<128xf32>
    %38 = vector.shape_cast %37 : vector<128xf32> to vector<1x128xf32>
    %cst_19 = arith.constant 1.250000e-01 : f32
    %39 = vector.broadcast %cst_19 : f32 to vector<1x128xf32>
    %40 = arith.mulf %38, %39 : vector<1x128xf32>
    %c0_20 = arith.constant 0 : index
    %c0_21 = arith.constant 0 : index
    %41 = vector.load %arg5[%c0_20, %c0_21] : memref<1x128xf32, #tpu.memory_space<vmem>>, vector<1x128xf32>
    %cst_22 = arith.constant 9.99999974E-6 : f32
    %42 = vector.broadcast %cst_22 : f32 to vector<1x128xf32>
    %43 = arith.addf %40, %42 : vector<1x128xf32>
    %44 = math.rsqrt %43 : vector<1x128xf32>
    %45 = arith.mulf %41, %44 : vector<1x128xf32>
    %46 = vector.broadcast %45 : vector<1x128xf32> to vector<8x128xf32>
    %47 = arith.mulf %35, %46 : vector<8x128xf32>
    %c0_23 = arith.constant 0 : index
    %c0_24 = arith.constant 0 : index
    %48 = vector.load %arg6[%c0_23, %c0_24] : memref<1x128xf32, #tpu.memory_space<vmem>>, vector<1x128xf32>
    %49 = vector.broadcast %48 : vector<1x128xf32> to vector<8x128xf32>
    %50 = arith.addf %47, %49 : vector<8x128xf32>
    %cst_25 = arith.constant 0.000000e+00 : f32
    %51 = vector.broadcast %cst_25 : f32 to vector<8x128xf32>
    %52 = arith.maximumf %50, %51 : vector<8x128xf32>
    %c0_26 = arith.constant 0 : index
    %c0_27 = arith.constant 0 : index
    %53 = vector.load %arg7[%c0_26, %c0_27] : memref<8x128xf32, #tpu.memory_space<vmem>>, vector<8x128xf32>
    tpu.vector_store %arg7[%c0_26, %c0_27], %52 {strides = array<i32>} : memref<8x128xf32, #tpu.memory_space<vmem>>, vector<8x128xf32>,
    return
  }
}

</mosaic_0001>

<bundles_post_ra>
// kernel: mlp_forward.1
= control target key start
LH: loop header
LB: loop body
LE: loop exit
PB: predicated region body
PF: predicated region fallthrough
CT: control target
= control target key end

     0   :  { %12 = vsyncpa [#allocation3], 0  ;;  %s596_s0 = inlined_call_operand.vmem [shape: f32[8,128], index: 0, kind: input, shape index: {}]   ;;  %s597_s1 = inlined_call_operand.hbm [shape: bf16[128,128], index: 1, kind: input, shape index: {}]   ;;  %s598_s2 = inlined_call_operand.vmem [shape: f32[1,128], index: 2, kind: input, shape index: {}]   ;;  %s599_s3 = inlined_call_operand.vmem [shape: f32[1,128], index: 3, kind: input, shape index: {}]   ;;  %s600_s4 = inlined_call_operand.hbm [shape: bf16[128,128], index: 4, kind: input, shape index: {}]   ;;  %s601_s5 = inlined_call_operand.vmem [shape: f32[1,128], index: 5, kind: input, shape index: {}]   ;;  %s602_s6 = inlined_call_operand.vmem [shape: f32[1,128], index: 6, kind: input, shape index: {}]   ;;  %s603_s7 = inlined_call_operand.hbm [shape: f32[8,128], index: 7, kind: output, shape index: {}]  }
   0x1   :  { %13 = vsyncpa [#allocation6], 0 }
   0x2   :  { %14 = vsyncpa [#allocation4], 0  ;;  %s525_s24 = smov [#allocation2]  }
   0x3   :  { %s22_s25 = sshll.u32 %s525_s24, 4  ;;  %s23_s25 = int_to_ptr.vmem [resolvable:$true] %s22_s25 }
   0x4   :  { %s467_s26 = scalar_lea.vmem %s23_s25, 1024  ;;  %p472_p1 = scmp.lt.s32.totalorder %s23_s25, %s23_s25 }
   0x5   :  { %p468_p0 = scmp.ne.s32.totalorder %s23_s25, %s467_s26  ;;  %p473_p2 = scmp.lt.s32.totalorder %s467_s26, %s467_s26 }
   0x7   :  { %p474_p3 = por %p473_p2, %p472_p1 }
   0x9   :  { %p475_p4 = pnand %p474_p3, %p468_p0 }
   0xb   :  { %478 = shalt.err (!%p475_p4)
}
   0xc   :  { %s526_s27 = smov 64   ;;  %s527_s28 = smov 4  }
   0xd   :  { %28 = dma.hbm_to_vmem [thread:$0]  %s597_s1, 1024, %s23_s25, [#allocation3], %s526_s27, %s526_s27, %s527_s28  }
   0xe   :  { %s528_s8 = smov [#allocation5]  }
   0xf   :  { %s38_s9 = sshll.u32 %s528_s8, 4  ;;  %s39_s9 = int_to_ptr.vmem [resolvable:$true] %s38_s9 }
  0x10   :  { %s487_s10 = scalar_lea.vmem %s39_s9, 1024  ;;  %p492_p6 = scmp.lt.s32.totalorder %s39_s9, %s39_s9 }
  0x11   :  { %p488_p5 = scmp.ne.s32.totalorder %s39_s9, %s487_s10  ;;  %p493_p7 = scmp.lt.s32.totalorder %s487_s10, %s487_s10 }
  0x13   :  { %p494_p8 = por %p493_p7, %p492_p6 }
  0x15   :  { %p495_p9 = pnand %p494_p8, %p488_p5 }
  0x17   :  { %498 = shalt.err (!%p495_p9)
}
  0x18   :  { %44 = dma.hbm_to_vmem [thread:$0]  %s600_s4, 1024, %s39_s9, [#allocation6], %s526_s27, %s526_s27, %s527_s28  }
  0x19   :  { %519 = dma.done.wait [#allocation3], 1024  }
  0x1a   :  { %520 = vsyncadd [#allocation3], 4294966272 }
  0x1b   :  { %521 = dma.done.wait [#allocation6], 1024  }
  0x1c   :  { %522 = vsyncadd [#allocation6], 4294966272  ;;  %v529_v0 = vmov 0.0   ;;  %vm530_vm0 = vmmov 0   ;;  %v439_v1 = vld [vmem:[#allocation2 + $0x38] sm:$0xff]   ;;  %v440_v2 = vld [vmem:[#allocation2 + $0x30] sm:$0xff]   ;;  %v183_v40 = vlaneseq }
  0x1d   :  { %392 = vmatprep.subr.bf16.mxu0 %v529_v0  ;;  %408 = vmatprep.mubr.msk.bf16.mxu0 %vm530_vm0, %v529_v0  ;;  %v441_v3 = vld [vmem:[#allocation2 + $0x28] sm:$0xff]   ;;  %v442_v4 = vld [vmem:[#allocation2 + $0x20] sm:$0xff]   ;;  %v443_v5 = vld [vmem:[#allocation2 + $0x18] sm:$0xff]   ;;  %s531_s18 = smov [#allocation7]  }
  0x1e   :  { %412 = vmatprep.subr.bf16.mxu1 %v529_v0  ;;  %428 = vmatprep.mubr.msk.bf16.mxu1 %vm530_vm0, %v529_v0  ;;  %v444_v6 = vld [vmem:[#allocation2 + $0x10] sm:$0xff]   ;;  %v445_v7 = vld [vmem:[#allocation2 + $0x8] sm:$0xff]   ;;  %v446_v8 = vld [vmem:[#allocation2] sm:$0xff]   ;;  %v184_v41 = vshrl.u32 %v183_v40, 7  ;;  %s346_s19 = sshll.u32 %s531_s18, 4  ;;  %s347_s19 = int_to_ptr.vmem [resolvable:$true] %s346_s19 }
  0x1f   :  { %393 = vmatpush3.bf16.msra.mxu0 %v439_v1  ;;  %v56_v9 = vld [vmem:[%s596_s0] sm:$0xff]  ;;  %v447_v11 = vld [vmem:[#allocation5 + $0x38] sm:$0xff]   ;;  %v448_v12 = vld [vmem:[#allocation5 + $0x30] sm:$0xff]   ;;  %s499_s20 = scalar_lea.vmem %s347_s19, 128  ;;  %p504_p11 = scmp.lt.s32.totalorder %s347_s19, %s347_s19 }
  0x20   :  { %394 = vmatprep.subr.bf16.mxu0 %v529_v0  ;;  %v57_v10 = vpack.c.bf16 %v56_v9, %v56_v9  ;;  %413 = vmatpush3.bf16.msra.mxu1 %v447_v11  ;;  %v449_v13 = vld [vmem:[#allocation5 + $0x28] sm:$0xff]   ;;  %v450_v14 = vld [vmem:[#allocation5 + $0x20] sm:$0xff]   ;;  %v451_v15 = vld [vmem:[#allocation5 + $0x18] sm:$0xff]   ;;  %v185_v43 = vsub.s32 0, %v184_v41  ;;  %p500_p10 = scmp.ne.s32.totalorder %s347_s19, %s499_s20  ;;  %p505_p12 = scmp.lt.s32.totalorder %s499_s20, %s499_s20 }
  0x21   :  { %414 = vmatprep.subr.bf16.mxu1 %v529_v0  ;;  %v452_v16 = vld [vmem:[#allocation5 + $0x10] sm:$0xff]   ;;  %v453_v17 = vld [vmem:[#allocation5 + $0x8] sm:$0xff]   ;;  %v454_v18 = vld [vmem:[#allocation5] sm:$0xff]  }
  0x22   :  { %v178_v42 = vld [vmem:[%s598_s2] sm:$0x1]  ;;  %p506_p13 = por %p505_p12, %p504_p11 }
  0x23   :  { %395 = vmatpush3.bf16.msra.mxu0 %v440_v2  ;;  %v364_v47 = vld [vmem:[%s599_s3] ss:$0 sm:$0xff] }
  0x24   :  { %396 = vmatprep.subr.bf16.mxu0 %v529_v0  ;;  %415 = vmatpush3.bf16.msra.mxu1 %v448_v12  ;;  %v319_v9 = vld [vmem:[%s601_s5] sm:$0x1]  ;;  %p507_p0 = pnand %p506_p13, %p500_p10 }
  0x25   :  { %416 = vmatprep.subr.bf16.mxu1 %v529_v0 }
  0x27   :  { %397 = vmatpush3.bf16.msra.mxu0 %v441_v3 }
  0x28   :  { %398 = vmatprep.subr.bf16.mxu0 %v529_v0  ;;  %417 = vmatpush3.bf16.msra.mxu1 %v449_v13  ;;  %v373_v13 = vld [vmem:[%s602_s6] ss:$0 sm:$0xff] }
  0x29   :  { %418 = vmatprep.subr.bf16.mxu1 %v529_v0 }
  0x2b   :  { %399 = vmatpush3.bf16.msra.mxu0 %v442_v4 }
  0x2c   :  { %400 = vmatprep.subr.bf16.mxu0 %v529_v0  ;;  %419 = vmatpush3.bf16.msra.mxu1 %v450_v14 }
  0x2d   :  { %420 = vmatprep.subr.bf16.mxu1 %v529_v0 }
  0x2f   :  { %401 = vmatpush3.bf16.msra.mxu0 %v443_v5 }
  0x30   :  { %402 = vmatprep.subr.bf16.mxu0 %v529_v0  ;;  %421 = vmatpush3.bf16.msra.mxu1 %v451_v15 }
  0x31   :  { %422 = vmatprep.subr.bf16.mxu1 %v529_v0 }
  0x33   :  { %403 = vmatpush3.bf16.msra.mxu0 %v444_v6 }
  0x34   :  { %404 = vmatprep.subr.bf16.mxu0 %v529_v0  ;;  %423 = vmatpush3.bf16.msra.mxu1 %v452_v16 }
  0x35   :  { %424 = vmatprep.subr.bf16.mxu1 %v529_v0 }
  0x37   :  { %405 = vmatpush3.bf16.msra.mxu0 %v445_v7 }
  0x38   :  { %406 = vmatprep.subr.bf16.mxu0 %v529_v0  ;;  %425 = vmatpush3.bf16.msra.mxu1 %v453_v17 }
  0x39   :  { %426 = vmatprep.subr.bf16.mxu1 %v529_v0 }
  0x3b   :  { %407 = vmatpush3.bf16.msra.mxu0 %v446_v8 }
  0x3c   :  { %427 = vmatpush3.bf16.msra.mxu1 %v454_v18 }
  0x3e   :  { %409 = vmatmul.mubr.bf16.vlgmr.msra.gmra.mxu0 %v57_v10 }
  0xfe   :  { %v156_v19 = vpop.f32.mrf.mxu0 }
  0xff   :  { %v162_v20 = vrot.slane %v156_v19, 4 }
 0x100   :  { %v410_v21 = vpop.f32.mrf.mxu0 }
 0x101   :  { %v163_v22 = vadd.f32 %v162_v20, %v156_v19 }
 0x102   :  { %v159_v23 = vpop.f32.mrf.mxu0 }
 0x103   :  { %v164_v24 = vrot.slane %v163_v22, 2 }
 0x104   :  { %v411_v25 = vpop.f32.mrf.mxu0 }
 0x105   :  { %v165_v26 = vadd.f32 %v164_v24, %v163_v22 }
 0x107   :  { %v166_v27 = vrot.slane %v165_v26, 1 }
 0x109   :  { %v167_v28 = vadd.f32 %v166_v27, %v165_v26 }
 0x10b   :  { %v168_v29 = vmul.f32 0.125, %v167_v28 }
 0x10d   :  { %v169_v30 = vsub.f32 %v156_v19, %v168_v29 }
 0x10f   :  { %v170_v31 = vmul.f32 %v169_v30, %v169_v30 }
 0x111   :  { %v171_v32 = vrot.slane %v170_v31, 4 }
 0x113   :  { %v172_v33 = vadd.f32 %v171_v32, %v170_v31 }
 0x115   :  { %v173_v34 = vrot.slane %v172_v33, 2 }
 0x117   :  { %v174_v35 = vadd.f32 %v173_v34, %v172_v33 }
 0x119   :  { %v175_v36 = vrot.slane %v174_v35, 1 }
 0x11b   :  { %v176_v37 = vadd.f32 %v175_v36, %v174_v35 }
 0x11d   :  { %v177_v38 = vmul.f32 0.125, %v176_v37 }
 0x11f   :  { %v179_v39 = vadd.f32 1e-05, %v177_v38 }
 0x121   :  { %455 = vrsqrt.f32 %v179_v39 }
 0x12e   :  { %v456_v44 = vpop.eup %455 }
 0x12f   :  { %v181_v45 = vmul.f32 %v456_v44, %v178_v42 }
 0x131   :  { %v186_v46 = vrot.slane %v181_v45, %v185_v43 }
 0x133   :  { %v188_v48 = vmul.f32 %v186_v46, %v169_v30 }
 0x135   :  { %v196_v49 = vadd.f32 %v364_v47, %v188_v48 }
 0x137   :  { %v197_v50 = vmax.f32 %v196_v49, 0.0 }
 0x139   :  { %v198_v51 = vpack.c.bf16 %v197_v50, %v197_v50 }
 0x13b   :  { %429 = vmatmul.mubr.bf16.vlgmr.msra.gmra.mxu1 %v198_v51 }
 0x1fb   :  { %v297_v52 = vpop.f32.mrf.mxu1 }
 0x1fc   :  { %v303_v53 = vrot.slane %v297_v52, 4 }
 0x1fd   :  { %v430_v54 = vpop.f32.mrf.mxu1 }
 0x1fe   :  { %v304_v55 = vadd.f32 %v303_v53, %v297_v52 }
 0x1ff   :  { %v300_v56 = vpop.f32.mrf.mxu1 }
 0x200   :  { %v305_v57 = vrot.slane %v304_v55, 2 }
 0x201   :  { %v431_v58 = vpop.f32.mrf.mxu1 }
 0x202   :  { %v306_v59 = vadd.f32 %v305_v57, %v304_v55 }
 0x204   :  { %v307_v60 = vrot.slane %v306_v59, 1 }
 0x206   :  { %v308_v61 = vadd.f32 %v307_v60, %v306_v59 }
 0x208   :  { %v309_v62 = vmul.f32 0.125, %v308_v61 }
 0x20a   :  { %v310_v63 = vsub.f32 %v297_v52, %v309_v62 }
 0x20c   :  { %v311_v0 = vmul.f32 %v310_v63, %v310_v63 }
 0x20e   :  { %v312_v1 = vrot.slane %v311_v0, 4 }
 0x210   :  { %v313_v2 = vadd.f32 %v312_v1, %v311_v0 }
 0x212   :  { %v314_v3 = vrot.slane %v313_v2, 2 }
 0x214   :  { %v315_v4 = vadd.f32 %v314_v3, %v313_v2 }
 0x216   :  { %v316_v5 = vrot.slane %v315_v4, 1 }
 0x218   :  { %v317_v6 = vadd.f32 %v316_v5, %v315_v4 }
 0x21a   :  { %v318_v7 = vmul.f32 0.125, %v317_v6 }
 0x21c   :  { %v320_v8 = vadd.f32 1e-05, %v318_v7 }
 0x21e   :  { %457 = vrsqrt.f32 %v320_v8 }
 0x22b   :  { %v458_v10 = vpop.eup %457 }
 0x22c   :  { %v322_v11 = vmul.f32 %v458_v10, %v319_v9 }
 0x22e   :  { %v327_v12 = vrot.slane %v322_v11, %v185_v43 }
 0x230   :  { %v329_v14 = vmul.f32 %v327_v12, %v310_v63 }
 0x232   :  { %v337_v15 = vadd.f32 %v373_v13, %v329_v14 }
 0x234   :  { %v338_v16 = vmax.f32 %v337_v15, 0.0 }
 0x236   :  { %339 = vst [vmem:[#allocation7] sm:$0xff] %v338_v16 }
 0x237   :  { %510 = shalt.err (!%p507_p0)
}
 0x238   :  { %349 = dma.vmem_to_hbm [thread:$0]  %s347_s19, 128, %s603_s7, [#allocation4]  }
 0x239   :  { %523 = dma.done.wait [#allocation4], 128  }
 0x23a   :  { %524 = vsyncadd [#allocation4], 4294967168 }
 0x23b   :  { %353 = vsyncpa [#allocation3], 1 }
 0x23c   :  { %354 = vsyncpa [#allocation6], 1 }
 0x23d   :  { %355 = vsyncpa [#allocation4], 1 }

</bundles_post_ra>
